<compile_context>
chip_gen: v7x
topology: tpu7x:2x2x1
jax: 0.10.0
libtpu: 0.0.40
codegen_flags: <defaults>
</compile_context>

<pallas_src>
import math
import jax
import jax.numpy as jnp
from jax.experimental import pallas as pl
from jax.experimental.pallas import tpu as pltpu


def _round_up(x, m):
    return ((x + m - 1) // m) * m


def _largest_divisor_tile(dim_padded, cap, unit):
    """Largest multiple of `unit` that divides `dim_padded` and is <= cap."""
    t = min(cap, dim_padded)
    t = max(unit, (t // unit) * unit)
    while dim_padded % t:
        t -= unit
    return t


def _vmem_budgets():
    """Generation-aware VMEM knobs: (mosaic vmem limit, per-step budget, tile cap)."""
    vmem_cap = 64 * 1024 * 1024            # conservative default (v7x per-TC size)
    try:
        info = pltpu.get_tpu_info()
        vmem_cap = int(getattr(info, "vmem_capacity_bytes", vmem_cap))
    except Exception:
        pass
    if vmem_cap >= 100 * 1024 * 1024:      # v5e / v6e: 128 MiB VMEM per core
        return 96 * 1024 * 1024, 56 * 1024 * 1024, 1024
    # v7x: only 64 MiB per TensorCore -- hold the line on tile / buffer sizes.
    return 48 * 1024 * 1024, 22 * 1024 * 1024, 512


def _maybe_buffered_spec(shape, index_map, triple):
    """BlockSpec, optionally 3-deep pipelined (falls back cleanly if unsupported)."""
    if triple:
        try:
            return pl.BlockSpec(shape, index_map, pipeline_mode=pl.Buffered(3))
        except Exception:
            pass
    return pl.BlockSpec(shape, index_map)


def _vlinear_kernel_nk1(x_ref, w_ref, b_ref, o_ref):
    # Whole contraction dim resident: single MXU pass, no accumulator scratch,
    # result (+bias) written straight to the output block.
    acc = jnp.einsum("eik,eko->eio", x_ref[...], w_ref[...],
                     preferred_element_type=jnp.float32)
    o_ref[...] = (acc + b_ref[...].astype(jnp.float32)).astype(o_ref.dtype)


def _vlinear_kernel_acc(x_ref, w_ref, b_ref, o_ref, acc_ref):
    # Contraction dim tiled (grid axis 3): f32 accumulator scratch, ASSIGN on
    # the first k step (no zero-init pass), add bias / store on the last step.
    k = pl.program_id(3)
    part = jnp.einsum("eik,eko->eio", x_ref[...], w_ref[...],
                      preferred_element_type=jnp.float32)

    @pl.when(k == 0)
    def _():
        acc_ref[...] = part

    @pl.when(k > 0)
    def _():
        acc_ref[...] += part

    @pl.when(k == pl.num_programs(3) - 1)
    def _():
        o_ref[...] = (acc_ref[...]
                      + b_ref[...].astype(jnp.float32)).astype(o_ref.dtype)


def vectorized_linear(x, weight, bias):
    """Pallas TPU implementation of VectorizedLinear.forward.

    x:      (E, B, I)
    weight: (E, I, O)
    bias:   (E, 1, O)
    returns (E, B, O) == x @ weight + bias (broadcast over the ensemble axis)
    """
    E, B, I = x.shape
    Ew, Iw, O = weight.shape
    assert (Ew, Iw) == (E, I) and bias.shape == (E, 1, O)

    itemsize = jnp.dtype(x.dtype).itemsize
    vmem_limit, step_budget, tile_cap = _vmem_budgets()

    def step_bytes(e_blk, tm, tk, tn, need_acc):
        # double-buffered x / weight / bias tiles + double-buffered output tile
        # (+ f32 accumulator scratch when the K axis is tiled).
        b = e_blk * 2 * (tm * tk + tk * tn + tn) * itemsize
        b += e_blk * 2 * tm * tn * itemsize
        if need_acc:
            b += e_blk * tm * tn * 4
        return b

    # ---- M (batch) tile: keep the whole batch resident unless it is huge ----
    # A block dim equal to the full array extent satisfies the (8,128) rule, so
    # small/odd B needs NO padding at all.
    if B <= tile_cap:
        tm, B_pad = B, B
    else:
        B8 = _round_up(B, 8)
        tm = _largest_divisor_tile(B8, tile_cap, 8)
        B_pad = B8
        if tm < 128:                        # ugly divisors: pad rather than tiny tiles
            tm = min(tile_cap, 256)
            B_pad = _round_up(B, tm)

    # ---- N (output) / K (contraction) tiles ---------------------------------
    # Preference in the HBM-bound regime (weight streaming dominates):
    #   1) tn == O  -> x and weight each read exactly once, no x re-stream
    #   2) tk == I  -> no accumulator scratch, no K padding
    #   3) otherwise shrink 128-multiple tiles until the step fits the budget.
    def pick(dim, cap):
        dp = _round_up(dim, 128)
        return _largest_divisor_tile(dp, cap, 128), dp

    if step_bytes(1, tm, I, O, need_acc=False) <= step_budget:
        tk, I_pad, tn, O_pad = I, I, O, O   # fully untiled: zero padding / slicing
    else:
        tn, O_pad = O, O                    # try to keep the full output width
        if step_bytes(1, tm, 128, O, need_acc=True) > step_budget:
            tn, O_pad = pick(O, tile_cap)   # must tile O
            while tn > 128 and step_bytes(1, tm, 128, tn, True) > step_budget:
                tn, O_pad = pick(O, tn - 128)
        if step_bytes(1, tm, I, tn, need_acc=False) <= step_budget:
            tk, I_pad = I, I                # keep the contraction dim whole
        else:
            tk, I_pad = pick(I, tile_cap)
            while tk > 128 and step_bytes(1, tm, tk, tn, True) > step_budget:
                tk, I_pad = pick(I, tk - 128)

    n_b = B_pad // tm
    n_k = I_pad // tk
    n_o = O_pad // tn
    need_acc = n_k > 1

    # ---- batch ensemble members per grid step for tiny per-member matmuls ---
    # Amortizes ~600-cycle per-step overhead; capped so the in-kernel f32
    # matmul results stay within ~32 vregs, and so >= 2 parallel grid steps
    # remain (keeps both v7x TensorCores busy; harmless on single-TC v5e/v6e).
    def parallel_steps(eb):
        return (E // eb) * n_b * n_o

    e_blk = 1
    want_parallel = parallel_steps(1) >= 2
    for cand in range(2, E + 1):
        if E % cand:
            continue
        if cand * tm * tn > 32 * 1024:
            continue
        if step_bytes(cand, tm, tk, tn, need_acc) > step_budget:
            continue
        if want_parallel and parallel_steps(cand) < 2:
            continue
        e_blk = cand

    # ---- pad ONLY dims that genuinely have to be tiled ----------------------
    if B_pad != B or I_pad != I:
        x = jnp.pad(x, ((0, 0), (0, B_pad - B), (0, I_pad - I)))
    if I_pad != I or O_pad != O:
        weight = jnp.pad(weight, ((0, 0), (0, I_pad - I), (0, O_pad - O)))
    if O_pad != O:
        bias = jnp.pad(bias, ((0, 0), (0, 0), (0, O_pad - O)))

    grid = (E // e_blk, n_b, n_o, n_k)      # reduction (K) axis last

    x_spec = pl.BlockSpec((e_blk, tm, tk), lambda e, b, o, k: (e, b, k))
    b_spec = pl.BlockSpec((e_blk, 1, tn), lambda e, b, o, k: (e, 0, o))
    o_spec = pl.BlockSpec((e_blk, tm, tn), lambda e, b, o, k: (e, b, o))

    # Triple-buffer the dominant weight stream when it is actually re-fetched
    # across > 2 steps and a third buffer still fits the VMEM budget.
    w_steps = (E // e_blk) * n_o * n_k
    w_headroom = (step_bytes(e_blk, tm, tk, tn, need_acc)
                  + e_blk * tk * tn * itemsize) <= step_budget
    w_spec = _maybe_buffered_spec((e_blk, tk, tn), lambda e, b, o, k: (e, k, o),
                                  triple=(w_steps > 2 and w_headroom))

    if need_acc:
        kernel = _vlinear_kernel_acc
        scratch = [pltpu.VMEM((e_blk, tm, tn), jnp.float32)]
    else:
        kernel = _vlinear_kernel_nk1
        scratch = []

    cost = pl.CostEstimate(
        flops=2 * E * B * I * O,            # honest, unpadded flop count
        transcendentals=0,
        bytes_accessed=itemsize * (
            E * B_pad * I_pad * n_o         # x is re-streamed once per output tile
            + E * I_pad * O_pad             # weight read exactly once
            + E * O_pad                     # bias
            + E * B_pad * O_pad),           # output write
    )

    out = pl.pallas_call(
        kernel,
        out_shape=jax.ShapeDtypeStruct((E, B_pad, O_pad), x.dtype),
        grid_spec=pltpu.PrefetchScalarGridSpec(
            num_scalar_prefetch=0,
            grid=grid,
            in_specs=[x_spec, w_spec, b_spec],
            out_specs=o_spec,
            scratch_shapes=scratch,
        ),
        compiler_params=pltpu.CompilerParams(
            dimension_semantics=("parallel", "parallel", "parallel", "arbitrary"),
            vmem_limit_bytes=vmem_limit,
        ),
        cost_estimate=cost,
    )(x, weight, bias)

    if B_pad != B or O_pad != O:
        out = out[:, :B, :O]
    return out


def init_params(key, in_features, out_features, ensemble_size, dtype=jnp.float32):
    """Deterministic init mimicking the PyTorch module's reset_parameters:
    kaiming_uniform_(a=sqrt(5)) is applied per-ensemble to weight[layer],
    a 2D (in_features, out_features) tensor, so PyTorch's fan_in is its
    size(1) == out_features; bias is uniform in [-1/sqrt(fan_in), +...]."""
    kw, kb = jax.random.split(key)
    a = math.sqrt(5)
    fan_in_w = out_features
    gain = math.sqrt(2.0 / (1.0 + a * a))
    w_bound = gain * math.sqrt(3.0 / fan_in_w)
    weight = jax.random.uniform(
        kw, (ensemble_size, in_features, out_features),
        minval=-w_bound, maxval=w_bound, dtype=dtype)
    b_bound = 1.0 / math.sqrt(fan_in_w) if fan_in_w > 0 else 0.0
    bias = jax.random.uniform(
        kb, (ensemble_size, 1, out_features),
        minval=-b_bound, maxval=b_bound, dtype=dtype)
    return weight, bias


if __name__ == "__main__":
    key = jax.random.PRNGKey(0)
    k_x, k_p = jax.random.split(key)

    ensemble_size = 4
    batch = 8
    in_features = 32
    out_features = 32

    x = jax.random.normal(k_x, (ensemble_size, batch, in_features),
                          dtype=jnp.float32)
    weight, bias = init_params(k_p, in_features, out_features, ensemble_size)

    out = vectorized_linear(x, weight, bias)
    out = jax.block_until_ready(out)

    # Reference check against plain JAX (same semantics as x @ W + b).
    ref = jnp.einsum("ebi,eio->ebo", x, weight) + bias
    assert out.shape == (ensemble_size, batch, out_features)
    assert jnp.allclose(out, ref, atol=1e-5, rtol=1e-5)

    print("KERNEL_OK")
</pallas_src>

<mosaic_0001>
module attributes {stable_mosaic.version = 11 : i64} {
  func.func @_vlinear_kernel_nk1(%arg0: i32, %arg1: i32, %arg2: i32, %arg3: i32, %arg4: memref<2x8x32xf32, #tpu.memory_space<vmem>>, %arg5: memref<2x32x32xf32, #tpu.memory_space<vmem>>, %arg6: memref<2x1x32xf32, #tpu.memory_space<vmem>>, %arg7: memref<2x8x32xf32, #tpu.memory_space<vmem>>) attributes {dimension_semantics = [#tpu.dimension_semantics<parallel>, #tpu.dimension_semantics<parallel>, #tpu.dimension_semantics<parallel>, #tpu.dimension_semantics<arbitrary>], iteration_bounds = array<i64: 2, 1, 1, 1>, scalar_prefetch = 0 : i64, scratch_operands = 0 : i64, tpu.core_type = #tpu.core_type<tc>, window_params = [{transform_indices = @transform_0, window_bounds = array<i64: 2, 8, 32>}, {transform_indices = @transform_1, window_bounds = array<i64: 2, 32, 32>}, {transform_indices = @transform_2, window_bounds = array<i64: 2, 1, 32>}, {transform_indices = @transform_3, window_bounds = array<i64: 2, 8, 32>}]} {
    %c0 = arith.constant 0 : index
    %c0_0 = arith.constant 0 : index
    %c0_1 = arith.constant 0 : index
    %0 = vector.load %arg4[%c0, %c0_0, %c0_1] : memref<2x8x32xf32, #tpu.memory_space<vmem>>, vector<2x8x32xf32>
    %c0_2 = arith.constant 0 : index
    %c0_3 = arith.constant 0 : index
    %c0_4 = arith.constant 0 : index
    %1 = vector.load %arg5[%c0_2, %c0_3, %c0_4] : memref<2x32x32xf32, #tpu.memory_space<vmem>>, vector<2x32x32xf32>
    "tpu.trace_start"() <{level = 10 : i32, message = "eik,eko->eio"}> : () -> ()
    %cst = arith.constant dense<0.000000e+00> : vector<2x8x32xf32>
    %2 = tpu.matmul %0, %1, %cst {dimension_numbers = #tpu.dot_dimension_numbers<[2], [1], [1], [2], [0, 0, 0, 1, 1, 2], [0], [0]>} : vector<2x8x32xf32>, vector<2x32x32xf32>, vector<2x8x32xf32> -> vector<2x8x32xf32>
    "tpu.trace_stop"() : () -> ()
    %c0_5 = arith.constant 0 : index
    %c0_6 = arith.constant 0 : index
    %c0_7 = arith.constant 0 : index
    %3 = vector.load %arg6[%c0_5, %c0_6, %c0_7] : memref<2x1x32xf32, #tpu.memory_space<vmem>>, vector<2x1x32xf32>
    %4 = vector.broadcast %3 : vector<2x1x32xf32> to vector<2x8x32xf32>
    %5 = arith.addf %2, %4 : vector<2x8x32xf32>
    %c0_8 = arith.constant 0 : index
    %c0_9 = arith.constant 0 : index
    %c0_10 = arith.constant 0 : index
    %6 = vector.load %arg7[%c0_8, %c0_9, %c0_10] : memref<2x8x32xf32, #tpu.memory_space<vmem>>, vector<2x8x32xf32>
    tpu.vector_store %arg7[%c0_8, %c0_9, %c0_10], %5 {strides = array<i32>} : memref<2x8x32xf32, #tpu.memory_space<vmem>>, vector<2x8x32xf32>,
    return
  }
  func.func @transform_0(%arg0: i32, %arg1: i32, %arg2: i32, %arg3: i32) -> (i32, i32, i32) {
    %c0_i32 = arith.constant 0 : i32
    return %arg0, %arg1, %arg3 : i32, i32, i32
  }
  func.func @transform_1(%arg0: i32, %arg1: i32, %arg2: i32, %arg3: i32) -> (i32, i32, i32) {
    %c0_i32 = arith.constant 0 : i32
    return %arg0, %arg3, %arg2 : i32, i32, i32
  }
  func.func @transform_2(%arg0: i32, %arg1: i32, %arg2: i32, %arg3: i32) -> (i32, i32, i32) {
    %c0_i32 = arith.constant 0 : i32
    %c0_i32_0 = arith.constant 0 : i32
    return %arg0, %c0_i32, %arg2 : i32, i32, i32
  }
  func.func @transform_3(%arg0: i32, %arg1: i32, %arg2: i32, %arg3: i32) -> (i32, i32, i32) {
    %c0_i32 = arith.constant 0 : i32
    return %arg0, %arg1, %arg2 : i32, i32, i32
  }
}

</mosaic_0001>

<bundles_post_ra>
// kernel: tpu_custom_call.1
= control target key start
LH: loop header
LB: loop body
LE: loop exit
PB: predicated region body
PF: predicated region fallthrough
CT: control target
= control target key end

     0   :  { %8 = vsyncpa [#allocation3], 0  ;;  %s1197_s0 = inlined_call_operand.hbm [shape: f32[4,8,32], index: 0, kind: input, shape index: {}]   ;;  %s1198_s1 = inlined_call_operand.hbm [shape: f32[4,32,32], index: 1, kind: input, shape index: {}]   ;;  %s1199_s2 = inlined_call_operand.vmem [shape: f32[4,1,32], index: 2, kind: input, shape index: {}]   ;;  %s1200_s3 = inlined_call_operand.hbm [shape: f32[4,8,32], index: 3, kind: output, shape index: {}]  }
   0x1   :  { %10 = vsyncpa [#allocation3 + $0x1], 0 }
   0x2   :  { %11 = vsyncpa [#allocation6], 0 }
   0x3   :  { %13 = vsyncpa [#allocation6 + $0x1], 0 }
   0x4   :  { %14 = vsyncpa [#allocation4], 0 }
   0x5   :  { %16 = vsyncpa [#allocation4 + $0x1], 0  ;;  %s950_s12 = smov 0   ;;  %s952_s13 = smov 0  }
   0x6   :  { %s954_s14 = smov 0   ;;  %s956_s15 = smov 0  }
   0x7   :  { %s958_s16 = smov 0   ;;  %s960_s17 = smov 0  }
   0x8 LB: > { %s625_s18 = sadd.s32 4294967295, %s918_s17   ;;  %s626_s19 = sadd.s32 4294967294, %s918_s17   ;;  %s918_s17 = sphi %s960_s17, %s22_s17   ;;  %s914_s16 = sphi %s958_s16, %s1218_s16   ;;  %s910_s15 = sphi %s956_s15, %s1217_s15   ;;  %s906_s14 = sphi %s954_s14, %s1216_s14   ;;  %s902_s13 = sphi %s952_s13, %s1215_s13   ;;  %s898_s12 = sphi %s950_s12, %s1214_s12  }
   0x9   : > { %s48_s20 = sadd.s32 1, %s914_s16  ;;  %s59_s21 = sadd.s32 1, %s906_s14 }
   0xa   : > { %p50_p0 = scmp.ge.s32.totalorder %s48_s20, 2  ;;  %p66_p1 = scmp.ne.s32.totalorder %s906_s14, %s902_s13 }
   0xb   : > { %p67_p2 = scmp.eq.s32.totalorder %s918_s17, 0  ;;  %p72_p3 = scmp.ne.s32.totalorder %s902_s13, %s898_s12 }
   0xc   : > { %s1220_s20 = smov (%p50_p0, %s48_s20), 0  ;;  %p73_p5 = scmp.eq.s32.totalorder %s625_s18, 0 }
   0xd   : > { %p991_p4 = por %p67_p2, %p66_p1  ;;  %s52_s23 = ssub.s32 %s914_s16, %s1220_s20 }
   0xe   : > { %p158_p6 = scmp.eq.s32.totalorder %s625_s18, 1  ;;  %p57_p7 = scmp.eq.s32.totalorder %s52_s23, 0 }
   0xf   : > { %p997_p8 = por %p73_p5, %p72_p3  ;;  %p164_p10 = scmp.eq.s32.totalorder %s626_s19, 1 }
  0x10   : > { %p1001_p9 = por %p158_p6, %p66_p1  ;;  %p715_p13 = scmp.lt.s32.totalorder %s918_s17, 2 }
  0x11   : > { %s1204_s24 = scalar_select %p997_p8, 1, 0 }
  0x12   : > { %s1205_s25 = scalar_select %p1001_p9, 1, 0 }
  0x13   : > { %s1006_s26 = scalar_select %p57_p7, %s906_s14, %s59_s21  }
  0x14   : > { %p1008_p11 = por %p164_p10, %p72_p3  ;;  %s1015_s28 = sand.u32 1, %s906_s14  }
  0x15   : > { %s629_s29 = sshll.u32 %s1015_s28, 4  ;;  %s650_s30 = sshll.u32 %s914_s16, 8 }
  0x16   : > { %s1206_s27 = scalar_select %p1008_p11, 1, 0 }
  0x17   : > { %s1022_s6 = scalar_lea.hbm %s1197_s0, %s650_s30  ;;  %s188_s7 = scalar_lea.vmem [#allocation2], %s629_s29 }
  0x18   : > { %s197_s8 = sshll.u32 %s188_s7, 4  ;;  %p1028_p0 = pnand %p715_p13, %p991_p4  ;;  %s1024_s8 = int_to_ptr.vmem [resolvable:$true] %s197_s8 }
  0x19   : > { %s185_s10 = scalar_lea.sflag [#allocation3], %s1015_s28  ;;  %s772_s11 = scalar_lea.hbm %s1022_s6, 256 }
  0x1a   : > { %p773_p2 = scmp.ne.s32.totalorder %s1022_s6, %s772_s11  ;;  %p774_p3 = pneg %p1028_p0 }
  0x1b   : > { %s777_s21 = scalar_lea.hbm %s1197_s0, 512  ;;  %p778_p4 = scmp.lt.u32.totalorder %s1022_s6, %s1197_s0 }
  0x1c   : > { %p775_p5 = pnand %p774_p3, %p773_p2  ;;  %p779_p7 = scmp.lt.u32.totalorder %s777_s21, %s772_s11 }
  0x1d   : > { %p781_p13 = scmp.lt.u32.totalorder %s772_s11, %s1022_s6 }
  0x1e   : > { %p776_p6 = pneg %p775_p5  ;;  %p780_p10 = por %p779_p7, %p778_p4 }
  0x20   : > { %p782_p12 = por %p781_p13, %p780_p10 }
  0x22   : > { %p783_p1 = pnand %p782_p12, %p776_p6 }
  0x24   : > { %786 = shalt.err (!%p783_p1)
}
  0x25   : > { %s787_s29 = scalar_lea.vmem %s1024_s8, 256  ;;  %s920_s30 = smov [#allocation2]  }
  0x26   : > { %p788_p2 = scmp.ne.s32.totalorder %s1024_s8, %s787_s29  ;;  %s792_s4 = sshll.u32 %s920_s30, 4  ;;  %s793_s4 = int_to_ptr.vmem [resolvable:$false] %s792_s4 }
  0x27   : > { %s794_s5 = scalar_lea.vmem %s793_s4, 512  ;;  %p795_p9 = scmp.lt.s32.totalorder %s1024_s8, %s793_s4 }
  0x28   : > { %p790_p5 = pnand %p788_p2, %p774_p3  ;;  %p796_p4 = scmp.lt.s32.totalorder %s794_s5, %s787_s29 }
  0x2a   : > { %p791_p11 = pneg %p790_p5  ;;  %p797_p7 = por %p796_p4, %p795_p9 }
  0x2c   : > { %p798_p10 = pnand %p797_p7, %p791_p11 }
  0x2e   : > { %801 = shalt.err (!%p798_p10)
}
  0x2f   : > { %s921_s7 = smov 128   ;;  %s922_s11 = smov 8  }
  0x30   : > { %707 = dma.hbm_to_vmem [thread:$0]  (!%p1028_p0), %s1022_s6, 256, %s1024_s8, %s185_s10, %s921_s7, %s921_s7, %s922_s11  }
  0x31   : > { %p241_p9 = scmp.lt.s32.totalorder %s918_s17, 3  ;;  %s632_s18 = sshll.u32 %s1015_s28, 6 }
  0x32   : > { %s652_s19 = sshll.u32 %s914_s16, 10  ;;  %p1208_p11 = scmp.ge.s32.totalorder %s918_s17, 1 }
  0x33   : > { %s1076_s29 = scalar_lea.hbm %s1198_s1, %s652_s19  ;;  %s211_s30 = scalar_lea.vmem [#allocation5], %s632_s18 }
  0x34   : > { %p1069_p12 = pnand %p1208_p11, %p241_p9  ;;  %s222_s4 = sshll.u32 %s211_s30, 4  ;;  %s1078_s4 = int_to_ptr.vmem [resolvable:$true] %s222_s4 }
  0x35   : > { %s208_s6 = scalar_lea.sflag [#allocation6], %s1015_s28  ;;  %s802_s8 = scalar_lea.hbm %s1076_s29, 1024 }
  0x36   : > { %p803_p1 = scmp.ne.s32.totalorder %s1076_s29, %s802_s8  ;;  %s807_s19 = scalar_lea.hbm %s1198_s1, 2048 }
  0x37   : > { %p808_p2 = scmp.lt.u32.totalorder %s1076_s29, %s1198_s1  ;;  %p809_p5 = scmp.lt.u32.totalorder %s807_s19, %s802_s8 }
  0x38   : > { %p805_p6 = pnand %p803_p1, %p774_p3  ;;  %p811_p7 = scmp.lt.u32.totalorder %s802_s8, %s1076_s29 }
  0x39   : > { %p810_p4 = por %p809_p5, %p808_p2 }
  0x3a   : > { %p806_p13 = pneg %p805_p6 }
  0x3b   : > { %p812_p10 = por %p811_p7, %p810_p4 }
  0x3d   : > { %p813_p9 = pnand %p812_p10, %p806_p13 }
  0x3f   : > { %816 = shalt.err (!%p813_p9)
}
  0x40   : > { %s817_s18 = scalar_lea.vmem %s1078_s4, 1024  ;;  %s923_s30 = smov [#allocation5]  }
  0x41   : > { %p818_p11 = scmp.ne.s32.totalorder %s1078_s4, %s817_s18  ;;  %s822_s10 = sshll.u32 %s923_s30, 4  ;;  %s823_s10 = int_to_ptr.vmem [resolvable:$false] %s822_s10 }
  0x42   : > { %s824_s5 = scalar_lea.vmem %s823_s10, 2048  ;;  %p825_p8 = scmp.lt.s32.totalorder %s1078_s4, %s823_s10 }
  0x43   : > { %p820_p1 = pnand %p818_p11, %p774_p3  ;;  %p826_p2 = scmp.lt.s32.totalorder %s824_s5, %s817_s18 }
  0x45   : > { %p821_p6 = pneg %p820_p1  ;;  %p827_p5 = por %p826_p2, %p825_p8 }
  0x47   : > { %p828_p4 = pnand %p827_p5, %p821_p6 }
  0x49   : > { %831 = shalt.err (!%p828_p4)
}
  0x4a   : > { %710 = dma.hbm_to_vmem [thread:$0]  (!%p1028_p0), %s1076_s29, 1024, %s1078_s4, %s208_s6, %s921_s7, %s921_s7, %s922_s11  }
  0x4b   : > { %245 = sbr.rel (%p1069_p12) target bundleno = 326 (0x146), region = 32  ;;  %s1112_s8 = sand.u32 (!%p1069_p12), 1, %s902_s13  }
  0x4c   : > { %s637_s19 = sshll.u32 (!%p1069_p12), %s1112_s8, 4  ;;  %s248_s9 = scalar_lea.sflag (!%p1069_p12), [#allocation3], %s1112_s8 }
  0x4d   : > { %s1118_s22 = scalar_lea.vmem (!%p1069_p12), [#allocation2], %s637_s19  ;;  %p1210_p8 = scmp.ne.s32.totalorder (!%p1069_p12), %s1204_s24, 0 }
  0x52   : > { %885 = dma.done.wait (%p1210_p8), %s248_s9, 256  }
  0x53   : > { %887 = vsyncadd (%p1210_p8), %s248_s9, 4294967040  ;;  %s638_s28 = sshll.u32 %s1112_s8, 6  ;;  %s257_s7 = scalar_lea.sflag [#allocation6], %s1112_s8 }
  0x54   : > { %s260_s11 = scalar_lea.vmem [#allocation5], %s638_s28 }
  0x55   : > { %889 = dma.done.wait (%p1210_p8), %s257_s7, 1024  }
  0x56   : > { %891 = vsyncadd (%p1210_p8), %s257_s7, 4294966272  ;;  %v924_v0 = vmov 0.0|0.0   ;;  %vm925_vm0 = vmmov 0   ;;  %v926_v1 = vmov 0.0   ;;  %v309_v2 = vld [vmem:[%s260_s11] sm:$0xff]  ;;  %v310_v3 = vld [vmem:[%s260_s11 + $0x8] sm:$0xff] }
  0x57   : > { %686 = vmatprep.subr.bf16.mxu0 %v924_v0  ;;  %692 = vmatprep.subr.bf16.mxu1 %v924_v0  ;;  %v313_v4 = vld [vmem:[%s260_s11 + $0x20] sm:$0xff]  ;;  %v687_v5 = vpack.c.bf16 %v310_v3, %v309_v2  ;;  %v314_v6 = vld [vmem:[%s260_s11 + $0x28] sm:$0xff]  ;;  %v311_v7 = vld [vmem:[%s260_s11 + $0x10] sm:$0xff]  ;;  %vm331_vm1 = vcmask 261120   ;;  %s640_s24 = sshll.u32 %s910_s15, 1  ;;  %s294_s6 = scalar_lea.vmem [#allocation7], %s637_s19 }
  0x58   : > { %672 = vmatprep.mubr.msk.f32.mxu0 %vm925_vm0, %v926_v1  ;;  %683 = vmatprep.mubr.msk.f32.mxu1 %vm925_vm0, %v926_v1  ;;  %v312_v8 = vld [vmem:[%s260_s11 + $0x18] sm:$0xff]  ;;  %v693_v9 = vpack.c.bf16 %v314_v6, %v313_v4  ;;  %v315_v10 = vld [vmem:[%s260_s11 + $0x30] sm:$0xff]  ;;  %p299_p0 = scmp.lt.s32.totalorder %s640_s24, 3  ;;  %s496_s23 = sshll.u32 %s294_s6, 4  ;;  %s1141_s23 = int_to_ptr.vmem [resolvable:$true] %s496_s23 }
  0x59   : > { %v316_v11 = vld [vmem:[%s260_s11 + $0x38] sm:$0xff]  ;;  %688 = vmatpush3.bf16.msra.mxu0 %v687_v5  ;;  %v690_v12 = vpack.c.bf16 %v312_v8, %v311_v7  ;;  %v307_v14 = vld [vmem:[%s1118_s22] sm:$0xff]  ;;  %s653_s18 = sshll.u32 %s910_s15, 8  ;;  %s481_s15 = scalar_lea.sflag [#allocation4], %s1112_s8 }
  0x5a   : > { %694 = vmatpush3.bf16.msra.mxu1 %v693_v9  ;;  %689 = vmatprep.subr.bf16.mxu0 %v924_v0  ;;  %v696_v13 = vpack.c.bf16 %v316_v11, %v315_v10  ;;  %v308_v15 = vld [vmem:[%s1118_s22 + $0x8] sm:$0xff]  ;;  %s1222_s24 = smov (!%p299_p0, %s640_s24), 3  ;;  %s1146_s5 = scalar_lea.hbm %s1200_s3, %s653_s18 }
  0x5b   : > { %695 = vmatprep.subr.bf16.mxu1 %v924_v0  ;;  %s304_s4 = scalar_lea.vmem %s1199_s2, %s1222_s24  ;;  %s832_s19 = scalar_lea.vmem %s1141_s23, 256 }
  0x5c   : > { %v641_v16 = vld [vmem:[%s304_s4] ss:$0 sm:$0xff]  ;;  %v642_v17 = vld [vmem:[%s304_s4 + $0x1] ss:$0 sm:$0xff]  ;;  %p833_p3 = scmp.ne.s32.totalorder %s1141_s23, %s832_s19  ;;  %p1211_p12 = scmp.ne.s32.totalorder %s1205_s25, 0 }
  0x5d   : > { %691 = vmatpush3.bf16.msra.mxu0 %v690_v12  ;;  %s927_s9 = smov [#allocation7]  }
  0x5e   : > { %697 = vmatpush3.bf16.msra.mxu1 %v696_v13  ;;  %p834_p13 = pnand %p833_p3, %p1211_p12  ;;  %s836_s22 = sshll.u32 %s927_s9, 4  ;;  %s837_s22 = int_to_ptr.vmem [resolvable:$false] %s836_s22 }
  0x5f   : > { %s838_s28 = scalar_lea.vmem %s837_s22, 512  ;;  %p839_p10 = scmp.lt.s32.totalorder %s1141_s23, %s837_s22 }
  0x60   : > { %673 = vmatmul.mubr.msk.f32.vlgmr.msra.gmra.mrb[0].mxu0 %vm331_vm1, %v307_v14  ;;  %p835_p7 = pneg %p834_p13  ;;  %p840_p9 = scmp.lt.s32.totalorder %s838_s28, %s832_s19 }
  0x61   : > { %684 = vmatmul.mubr.msk.f32.vlgmr.msra.gmra.mrb[0].mxu1 %vm331_vm1, %v308_v15 }
  0x62   : > { %p841_p11 = por %p840_p9, %p839_p10 }
  0x64   : > { %p842_p1 = pnand %p841_p11, %p835_p7 }
 0x133   : > { %v401_v18 = vpop.f32.mrb[0].mxu0 }
 0x134   : > { %v402_v19 = vadd.f32 %v641_v16, %v401_v18  ;;  %v474_v20 = vpop.f32.mrb[0].mxu1  ;;  %v674_v21 = vpop.f32.mrb[1].mxu0 }
 0x135   : > { %v475_v22 = vadd.f32 %v642_v17, %v474_v20  ;;  %v685_v23 = vpop.f32.mrb[1].mxu1 }
 0x136   : > { %478 = vst.msk [vmem:[%s294_s6] sm:$0xff] %vm331_vm1, %v402_v19 }
 0x137   : > { %479 = vst.msk [vmem:[%s294_s6 + $0x8] sm:$0xff] %vm331_vm1, %v475_v22 }
 0x138   : > { %845 = shalt.err (!%p842_p1)
}
 0x139   : > { %s846_s7 = scalar_lea.hbm %s1146_s5, 256  ;;  %s850_s21 = scalar_lea.hbm %s1200_s3, 512 }
 0x13a   : > { %p847_p6 = scmp.ne.s32.totalorder %s1146_s5, %s846_s7  ;;  %p851_p4 = scmp.lt.u32.totalorder %s1146_s5, %s1200_s3 }
 0x13b   : > { %p852_p8 = scmp.lt.u32.totalorder %s850_s21, %s846_s7  ;;  %p854_p3 = scmp.lt.u32.totalorder %s846_s7, %s1146_s5 }
 0x13c   : > { %p848_p2 = pnand %p847_p6, %p1211_p12 }
 0x13d   : > { %p853_p0 = por %p852_p8, %p851_p4 }
 0x13e   : > { %p849_p5 = pneg %p848_p2 }
 0x13f   : > { %p855_p13 = por %p854_p3, %p853_p0 }
 0x141   : > { %p856_p7 = pnand %p855_p13, %p849_p5 }
 0x143   : > { %859 = shalt.err (!%p856_p7)
}
 0x144   : > { %s928_s6 = smov 128   ;;  %s929_s18 = smov 8  }
 0x145   : > { %702 = dma.vmem_to_hbm [thread:$0]  (%p1211_p12), %s1141_s23, 256, %s1146_s5, %s481_s15, %s928_s6, %s928_s6, %s929_s18  }
 0x146 PF: > { %s511_s30 = sand.u32 1, %s898_s12   ;;  %p1212_p10 = scmp.ne.s32.totalorder %s1206_s27, 0 }
 0x147   : > { %p1213_p9 = scmp.ge.s32.totalorder %s918_s17, 2  ;;  %s512_s10 = scalar_lea.sflag [#allocation4], %s511_s30 }
 0x149   : > { %p712_p11 = pnand %p1213_p9, %p1212_p10 }
 0x14b   : > { %893 = dma.done.wait (!%p712_p11), %s512_s10, 256  }
 0x14c   : > { %895 = vsyncadd (!%p712_p11), %s512_s10, 4294967040  ;;  %s22_s17 = sadd.s32 1, %s918_s17   ;;  %s1214_s12 = smov %s902_s13 }
 0x14d   : > { %p19_p1 = scmp.ge.s32.totalorder %s22_s17, 4   ;;  %s1215_s13 = smov %s906_s14 }
 0x14e   : > { %s1216_s14 = smov %s1006_s26  ;;  %s1217_s15 = smov %s914_s16 }
 0x14f   : > { %s1218_s16 = smov %s1220_s20  ;;  %21 = sbr.rel (!%p19_p1) target bundleno = 8 (0x8), region = 93 }
 0x156   :  { %517 = vsyncpa [#allocation3], 1 }
 0x157   :  { %519 = vsyncpa [#allocation3 + $0x1], 1 }
 0x158   :  { %520 = vsyncpa [#allocation6], 1 }
 0x159   :  { %522 = vsyncpa [#allocation6 + $0x1], 1 }
 0x15a   :  { %523 = vsyncpa [#allocation4], 1 }
 0x15b   :  { %525 = vsyncpa [#allocation4 + $0x1], 1 }

</bundles_post_ra>
